<compile_context>
chip_gen: v7x
topology: tpu7x:2x2x1
jax: 0.10.0
libtpu: 0.0.40
codegen_flags: <defaults>
</compile_context>

<pallas_src>
import functools
import math

import jax
import jax.numpy as jnp
from jax.experimental import pallas as pl
from jax.experimental.pallas import tpu as pltpu


def _round_up(x, m):
    return ((x + m - 1) // m) * m


def _cdiv(a, b):
    return -(-a // b)


def _vmem_capacity_bytes():
    try:
        info = pltpu.get_tpu_info()
        cap = int(getattr(info, "vmem_capacity_bytes", 0))
        if cap > 0:
            return cap
    except Exception:
        pass
    return 64 * 1024 * 1024  # conservative default (v7x per-TensorCore VMEM)


def _select_tiles(B, F, itemsize, block_b, block_f, vmem_cap):
    """Pick (TB, TK).  Respects (8,128) tiling rules and the VMEM budget."""
    # Per-X-buffer budget; the pipeline double-buffers, so 2*budget stays well
    # below physical VMEM on every generation (8 MiB on v7x, 16 MiB on v5e/v6e).
    x_budget = max(2 * 1024 * 1024, vmem_cap // 8)

    # Feature (reduction) tile: full F when small, else a lane-aligned chunk.
    tk_cap = block_f if block_f is not None else max(128, 4096 // itemsize)
    if F <= tk_cap:
        TK = F                                  # full dim -> no 128 constraint
    else:
        TK = max(128, (tk_cap // 128) * 128)    # must be a multiple of 128

    # Batch tile: as large as the VMEM budget allows, but keep >= 2 batch tiles
    # so the "parallel" grid axis can shard across v7x's two TensorCores.
    if B <= 8:
        TB = B                                  # full dim -> no 8 constraint
    else:
        tb_cap = block_b if block_b is not None else 4096
        tb_vmem = max(8, (x_budget // max(1, TK * itemsize)) // 8 * 8)
        tb_half = max(8, _round_up(_cdiv(B, 2), 8))
        TB = max(8, (min(tb_cap, tb_vmem, tb_half) // 8) * 8)
    return TB, TK


def fm_kernel(x_ref, w_ref, w2s_ref, o_ref, xw_acc, b_acc, *,
              inv_e, n_features, mask_k, compute_dtype, precision):
    """Grid = (batch_tiles, feature_tiles); the feature axis is the reduction."""
    k = pl.program_id(1)

    @pl.when(k == 0)
    def _init():
        xw_acc[...] = jnp.zeros_like(xw_acc)
        b_acc[...] = jnp.zeros_like(b_acc)

    xf = x_ref[...].astype(jnp.float32)                     # (TB, TK)
    if mask_k:
        # Last feature tile is ragged: zero the out-of-range columns so they
        # contribute nothing (jnp.where also kills any NaN garbage).
        tk = xf.shape[1]
        col = k * tk + jax.lax.broadcasted_iota(jnp.int32, xf.shape, 1)
        xf = jnp.where(col < n_features, xf, 0.0)

    # a-term partial sums: accumulate X @ W over feature tiles (single MXU dot,
    # f32 accumulation; compute_dtype/precision make the accuracy explicit).
    xw_acc[...] += jnp.dot(
        xf.astype(compute_dtype),
        w_ref[...].astype(compute_dtype),
        precision=precision,
        preferred_element_type=jnp.float32,
    )

    # b-term on VPU + XLU (no MXU matvec):
    #   sum_e(X^2 @ W^2) == X^2 . sum_e(W^2)   with w2s_ref a (1, TK) row.
    b_acc[...] += jnp.sum((xf * xf) * w2s_ref[...], axis=1, keepdims=True)

    @pl.when(k == pl.num_programs(1) - 1)
    def _finalize():
        xw = xw_acc[...]                                     # (TB, E) f32
        a_sum = jnp.sum(xw * xw, axis=1, keepdims=True)      # (TB, 1)
        mean = (a_sum - b_acc[...]) * inv_e
        o_ref[...] = jax.nn.sigmoid(mean).astype(o_ref.dtype)


def fm_forward(x, w, *, block_b=None, block_f=None, compute_dtype=None,
               precision=None):
    """out[i] = sigmoid(mean_e((x @ w)^2 - (x^2 @ w^2), axis=1))[i]."""
    B, F = x.shape
    Fw, E = w.shape
    assert F == Fw, (F, Fw)

    if compute_dtype is None:
        compute_dtype = jnp.float32
    compute_dtype = jnp.dtype(compute_dtype)
    if precision is None and compute_dtype == jnp.dtype(jnp.float32):
        # Explicit full-precision f32 MXU path to match the torch f32 module.
        precision = jax.lax.Precision.HIGHEST

    itemsize = jnp.dtype(x.dtype).itemsize
    vmem_cap = _vmem_capacity_bytes()
    TB, TK = _select_tiles(B, F, itemsize, block_b, block_f, vmem_cap)

    nb = _cdiv(B, TB)
    nk = _cdiv(F, TK)
    Fp = nk * TK
    mask_k = Fp != F

    # sum_e(W^2) as a lane-dense (1, F) row (computed once, f32).
    w2sum = jnp.sum(jnp.square(w.astype(jnp.float32)), axis=1)[None, :]  # (1, F)

    # Pad only the tiny W / w2sum arrays when the last K tile is ragged; X is
    # never padded (ragged tiles are masked in-kernel / on store instead).
    if mask_k:
        w_in = jnp.pad(w, ((0, Fp - F), (0, 0)))
        w2_in = jnp.pad(w2sum, ((0, 0), (0, Fp - F)))
    else:
        w_in, w2_in = w, w2sum

    kernel = functools.partial(
        fm_kernel,
        inv_e=1.0 / E,
        n_features=F,
        mask_k=mask_k,
        compute_dtype=compute_dtype,
        precision=precision,
    )

    # VMEM footprint estimate (lane/sublane padded) -> generation-aware limit.
    def _padded(r, c, isz):
        return _round_up(max(int(r), 1), 8) * _round_up(max(int(c), 1), 128) * isz

    w_isz = jnp.dtype(w.dtype).itemsize
    est = (2 * _padded(TB, TK, itemsize)        # X tile, double-buffered
           + 2 * _padded(TK, E, w_isz)          # W tile
           + 2 * _padded(1, TK, 4)              # w2sum tile
           + 2 * _padded(TB, 1, 4)              # output tile
           + _padded(TB, E, 4)                  # xw accumulator
           + _padded(TB, 1, 4))                 # b accumulator
    vmem_limit = int(min(vmem_cap * 3 // 4, max(32 * 1024 * 1024, 2 * est)))

    cost = pl.CostEstimate(
        flops=int(2 * B * F * E + 3 * B * F + 4 * B * E + 5 * B),
        transcendentals=int(B),
        bytes_accessed=int(B * F * itemsize + Fp * E * w_isz + Fp * 4 + B * 4),
    )

    out = pl.pallas_call(
        kernel,
        out_shape=jax.ShapeDtypeStruct((B, 1), jnp.float32),
        grid_spec=pltpu.PrefetchScalarGridSpec(
            num_scalar_prefetch=0,
            grid=(nb, nk),
            in_specs=[
                pl.BlockSpec((TB, TK), lambda i, k: (i, k)),   # X tile
                pl.BlockSpec((TK, E), lambda i, k: (k, 0)),    # W tile
                pl.BlockSpec((1, TK), lambda i, k: (0, k)),    # sum_e(W^2) row
            ],
            out_specs=pl.BlockSpec((TB, 1), lambda i, k: (i, 0)),
            scratch_shapes=[
                pltpu.VMEM((TB, E), jnp.float32),   # X @ W accumulator
                pltpu.VMEM((TB, 1), jnp.float32),   # X^2 . w2sum accumulator
            ],
        ),
        compiler_params=pltpu.CompilerParams(
            dimension_semantics=("parallel", "arbitrary"),
            vmem_limit_bytes=vmem_limit,
        ),
        cost_estimate=cost,
    )(x, w_in, w2_in)
    return out[:, 0]   # torch.mean(..., axis=1) -> (batch,)


def init_feature_weight(key, n_features, embedding_dim):
    # Matches nn.init.kaiming_uniform_ defaults (a=0, fan_in, leaky_relu):
    # fan_in = embedding_dim, bound = sqrt(2) * sqrt(3 / fan_in).
    bound = math.sqrt(2.0) * math.sqrt(3.0 / embedding_dim)
    return jax.random.uniform(
        key, (n_features, embedding_dim), jnp.float32, minval=-bound, maxval=bound
    )


def _ref_fm(x, w):
    # f32 reference matching the torch module (explicit highest precision so the
    # reference itself is not silently bf16 on TPU).
    hp = jax.lax.Precision.HIGHEST
    a = jnp.square(jnp.dot(x, w, precision=hp))
    b = jnp.dot(jnp.square(x), jnp.square(w), precision=hp)
    return jax.nn.sigmoid(jnp.mean(a - b, axis=1))


if __name__ == "__main__":
    key = jax.random.PRNGKey(0)
    kx, kw, kx2, kw2 = jax.random.split(key, 4)

    # Case 1: module defaults (single tile).
    batch, n_features, embedding_dim = 8, 32, 8
    x = jax.random.normal(kx, (batch, n_features), jnp.float32)
    w = init_feature_weight(kw, n_features, embedding_dim)
    out = fm_forward(x, w)
    jax.block_until_ready(out)
    assert out.shape == (batch,)
    ref = _ref_fm(x, w)
    assert jnp.allclose(out, ref, atol=5e-4, rtol=1e-4)

    # Case 2: multi-tile + ragged B and F (exercises in-kernel K masking and
    # the partial final batch tile; X is never padded).
    b2, f2, e2 = 40, 300, 8
    x2 = jax.random.normal(kx2, (b2, f2), jnp.float32)
    w2 = init_feature_weight(kw2, f2, e2)
    out2 = fm_forward(x2, w2, block_b=16, block_f=128)
    jax.block_until_ready(out2)
    assert out2.shape == (b2,)
    ref2 = _ref_fm(x2, w2)
    assert jnp.allclose(out2, ref2, atol=5e-4, rtol=1e-4)

    # Case 3: explicit bf16 MXU fast path (accuracy is a deliberate choice here;
    # checked for shape/finiteness only).
    out3 = fm_forward(x2, w2, compute_dtype=jnp.bfloat16)
    jax.block_until_ready(out3)
    assert out3.shape == (b2,)
    assert bool(jnp.all(jnp.isfinite(out3)))

    print("KERNEL_OK")
</pallas_src>

<mosaic_0001>
module attributes {stable_mosaic.version = 11 : i64} {
  func.func @fm_kernel(%arg0: i32, %arg1: i32, %arg2: memref<8x32xf32, #tpu.memory_space<vmem>>, %arg3: memref<32x8xf32, #tpu.memory_space<vmem>>, %arg4: memref<1x32xf32, #tpu.memory_space<vmem>>, %arg5: memref<8x1xf32, #tpu.memory_space<vmem>>, %arg6: memref<8x8xf32, #tpu.memory_space<vmem>>, %arg7: memref<8x1xf32, #tpu.memory_space<vmem>>) attributes {dimension_semantics = [#tpu.dimension_semantics<parallel>, #tpu.dimension_semantics<arbitrary>], iteration_bounds = array<i64: 1, 1>, scalar_prefetch = 0 : i64, scratch_operands = 2 : i64, tpu.core_type = #tpu.core_type<tc>, window_params = [{transform_indices = @transform_0, window_bounds = array<i64: 8, 32>}, {transform_indices = @transform_1, window_bounds = array<i64: 32, 8>}, {transform_indices = @transform_2, window_bounds = array<i64: 1, 32>}, {transform_indices = @transform_3, window_bounds = array<i64: 8, 1>}]} {
    %c0_i32 = arith.constant 0 : i32
    %0 = arith.cmpi eq, %arg1, %c0_i32 : i32
    %1 = arith.extui %0 : i1 to i32
    %c0_i32_0 = arith.constant 0 : i32
    %2 = arith.cmpi ne, %1, %c0_i32_0 : i32
    scf.if %2 {
      %cst_17 = arith.constant 0.000000e+00 : f32
      %21 = vector.broadcast %cst_17 : f32 to vector<8x8xf32>
      %c0_18 = arith.constant 0 : index
      %c0_19 = arith.constant 0 : index
      %22 = vector.load %arg6[%c0_18, %c0_19] : memref<8x8xf32, #tpu.memory_space<vmem>>, vector<8x8xf32>
      tpu.vector_store %arg6[%c0_18, %c0_19], %21 {strides = array<i32>} : memref<8x8xf32, #tpu.memory_space<vmem>>, vector<8x8xf32>,
      %cst_20 = arith.constant 0.000000e+00 : f32
      %23 = vector.broadcast %cst_20 : f32 to vector<8x1xf32>
      %c0_21 = arith.constant 0 : index
      %c0_22 = arith.constant 0 : index
      %24 = vector.load %arg7[%c0_21, %c0_22] : memref<8x1xf32, #tpu.memory_space<vmem>>, vector<8x1xf32>
      tpu.vector_store %arg7[%c0_21, %c0_22], %23 {strides = array<i32>} : memref<8x1xf32, #tpu.memory_space<vmem>>, vector<8x1xf32>,
    } else {
    }
    %c0 = arith.constant 0 : index
    %c0_1 = arith.constant 0 : index
    %3 = vector.load %arg2[%c0, %c0_1] : memref<8x32xf32, #tpu.memory_space<vmem>>, vector<8x32xf32>
    %c0_2 = arith.constant 0 : index
    %c0_3 = arith.constant 0 : index
    %4 = vector.load %arg6[%c0_2, %c0_3] : memref<8x8xf32, #tpu.memory_space<vmem>>, vector<8x8xf32>
    %c0_4 = arith.constant 0 : index
    %c0_5 = arith.constant 0 : index
    %5 = vector.load %arg3[%c0_4, %c0_5] : memref<32x8xf32, #tpu.memory_space<vmem>>, vector<32x8xf32>
    %cst = arith.constant dense<0.000000e+00> : vector<8x8xf32>
    %6 = tpu.matmul %3, %5, %cst {dimension_numbers = #tpu.dot_dimension_numbers<[1], [0], [0], [1], [0, 0, 1, 1], [], []>, precision = #tpu.contract_precision<fp32>} : vector<8x32xf32>, vector<32x8xf32>, vector<8x8xf32> -> vector<8x8xf32>
    %7 = arith.addf %4, %6 : vector<8x8xf32>
    %c0_6 = arith.constant 0 : index
    %c0_7 = arith.constant 0 : index
    %8 = vector.load %arg6[%c0_6, %c0_7] : memref<8x8xf32, #tpu.memory_space<vmem>>, vector<8x8xf32>
    tpu.vector_store %arg6[%c0_6, %c0_7], %7 {strides = array<i32>} : memref<8x8xf32, #tpu.memory_space<vmem>>, vector<8x8xf32>,
    %c0_8 = arith.constant 0 : index
    %c0_9 = arith.constant 0 : index
    %9 = vector.load %arg7[%c0_8, %c0_9] : memref<8x1xf32, #tpu.memory_space<vmem>>, vector<8x1xf32>
    %10 = arith.mulf %3, %3 : vector<8x32xf32>
    %c0_10 = arith.constant 0 : index
    %c0_11 = arith.constant 0 : index
    %11 = vector.load %arg4[%c0_10, %c0_11] : memref<1x32xf32, #tpu.memory_space<vmem>>, vector<1x32xf32>
    %12 = vector.broadcast %11 : vector<1x32xf32> to vector<8x32xf32>
    %13 = arith.mulf %10, %12 : vector<8x32xf32>
    %cst_12 = arith.constant dense<0.000000e+00> : vector<8xf32>
    %14 = vector.multi_reduction <add>, %13, %cst_12 [1] : vector<8x32xf32> to vector<8xf32>
    %15 = vector.shape_cast %14 : vector<8xf32> to vector<8x1xf32>
    %16 = arith.addf %9, %15 : vector<8x1xf32>
    %c0_13 = arith.constant 0 : index
    %c0_14 = arith.constant 0 : index
    %17 = vector.load %arg7[%c0_13, %c0_14] : memref<8x1xf32, #tpu.memory_space<vmem>>, vector<8x1xf32>
    tpu.vector_store %arg7[%c0_13, %c0_14], %16 {strides = array<i32>} : memref<8x1xf32, #tpu.memory_space<vmem>>, vector<8x1xf32>,
    %c0_i32_15 = arith.constant 0 : i32
    %18 = arith.cmpi eq, %arg1, %c0_i32_15 : i32
    %19 = arith.extui %18 : i1 to i32
    %c0_i32_16 = arith.constant 0 : i32
    %20 = arith.cmpi ne, %19, %c0_i32_16 : i32
    scf.if %20 {
      %c0_17 = arith.constant 0 : index
      %c0_18 = arith.constant 0 : index
      %21 = vector.load %arg6[%c0_17, %c0_18] : memref<8x8xf32, #tpu.memory_space<vmem>>, vector<8x8xf32>
      %22 = arith.mulf %21, %21 : vector<8x8xf32>
      %cst_19 = arith.constant dense<0.000000e+00> : vector<8xf32>
      %23 = vector.multi_reduction <add>, %22, %cst_19 [1] : vector<8x8xf32> to vector<8xf32>
      %24 = vector.shape_cast %23 : vector<8xf32> to vector<8x1xf32>
      %c0_20 = arith.constant 0 : index
      %c0_21 = arith.constant 0 : index
      %25 = vector.load %arg7[%c0_20, %c0_21] : memref<8x1xf32, #tpu.memory_space<vmem>>, vector<8x1xf32>
      %26 = arith.subf %24, %25 : vector<8x1xf32>
      %cst_22 = arith.constant 1.250000e-01 : f32
      %27 = vector.broadcast %cst_22 : f32 to vector<8x1xf32>
      %28 = arith.mulf %26, %27 : vector<8x1xf32>
      %29 = arith.negf %28 : vector<8x1xf32>
      %30 = math.exp %29 : vector<8x1xf32>
      %cst_23 = arith.constant 1.000000e+00 : f32
      %31 = vector.broadcast %cst_23 : f32 to vector<8x1xf32>
      %32 = arith.addf %31, %30 : vector<8x1xf32>
      %33 = arith.divf %31, %32 : vector<8x1xf32>
      %c0_24 = arith.constant 0 : index
      %c0_25 = arith.constant 0 : index
      %34 = vector.load %arg5[%c0_24, %c0_25] : memref<8x1xf32, #tpu.memory_space<vmem>>, vector<8x1xf32>
      tpu.vector_store %arg5[%c0_24, %c0_25], %33 {strides = array<i32>} : memref<8x1xf32, #tpu.memory_space<vmem>>, vector<8x1xf32>,
    } else {
    }
    return
  }
  func.func @transform_0(%arg0: i32, %arg1: i32) -> (i32, i32) {
    %c0_i32 = arith.constant 0 : i32
    return %arg0, %arg1 : i32, i32
  }
  func.func @transform_1(%arg0: i32, %arg1: i32) -> (i32, i32) {
    %c0_i32 = arith.constant 0 : i32
    %c0_i32_0 = arith.constant 0 : i32
    return %arg1, %c0_i32 : i32, i32
  }
  func.func @transform_2(%arg0: i32, %arg1: i32) -> (i32, i32) {
    %c0_i32 = arith.constant 0 : i32
    %c0_i32_0 = arith.constant 0 : i32
    return %c0_i32, %arg1 : i32, i32
  }
  func.func @transform_3(%arg0: i32, %arg1: i32) -> (i32, i32) {
    %c0_i32 = arith.constant 0 : i32
    %c0_i32_0 = arith.constant 0 : i32
    return %arg0, %c0_i32 : i32, i32
  }
}

</mosaic_0001>

<bundles_post_ra>
// kernel: tpu_custom_call.1
= control target key start
LH: loop header
LB: loop body
LE: loop exit
PB: predicated region body
PF: predicated region fallthrough
CT: control target
= control target key end

     0   :  { %vm28_vm0 = vcmask 261120   ;;  %v699_v0 = vmov 0.0|0.0   ;;  %vm700_vm1 = vmmov 0   ;;  %v701_v8 = vmov 0.0   ;;  %s782_s1 = inlined_call_operand.vmem [shape: f32[32,8], index: 1, kind: input, shape index: {}]   ;;  %s783_s0 = inlined_call_operand.vmem [shape: f32[8,32], index: 0, kind: input, shape index: {}]   ;;  %s784_s2 = inlined_call_operand.vmem [shape: f32[1,32], index: 2, kind: input, shape index: {}]   ;;  %s785_s3 = inlined_call_operand.vmem [shape: f32[8,1], index: 3, kind: output, shape index: {}]  }
   0x1   :  { %656 = vmatprep.subr.bf16.mxu0 %v699_v0  ;;  %v24_v1 = vld [vmem:[%s782_s1] sm:$0xff]  ;;  %v25_v2 = vld [vmem:[%s782_s1 + $0x8] sm:$0xff]  ;;  %v26_v3 = vld [vmem:[%s782_s1 + $0x10] sm:$0xff]  ;;  %662 = vmatprep.subr.bf16.mxu1 %v699_v0  ;;  %vm18_vm2 = vcmask 64512   ;;  %vm20_vm3 = vcmask 7168  }
   0x2   :  { %v33_v4 = vand.u32 4294901760, %v24_v1  ;;  %v36_v5 = vand.u32 4294901760, %v25_v2  ;;  %v27_v6 = vld [vmem:[%s782_s1 + $0x18] sm:$0xff]  ;;  %v39_v7 = vand.u32 4294901760, %v26_v3  ;;  %598 = vmatprep.mubr.msk.f32.mxu0 %vm700_vm1, %v701_v8  ;;  %v741_v9 = vld [vmem:[%s783_s0] sm:$0xff]  ;;  %609 = vmatprep.mubr.msk.f32.mxu1 %vm700_vm1, %v701_v8  ;;  %19 = vst.msk [vmem:[#allocation2] sm:$0xff] %vm18_vm2, %v701_v8 }
   0x3   :  { %v42_v10 = vand.u32 4294901760, %v27_v6  ;;  %v30_v11 = vsel %vm28_vm0, %v741_v9, 0  ;;  %v521_v41 = vmul.f32 %v741_v9, %v741_v9  ;;  %v558_v42 = vld [vmem:[%s784_s2] ss:$0 sm:$0xff]  ;;  %21 = vst.msk [vmem:[#allocation3] sm:$0xff] %vm20_vm3, %v701_v8 }
   0x4   :  { %v657_v12 = vpack.c.bf16 %v36_v5, %v33_v4  ;;  %v113_v13 = vsub.f32 %v24_v1, %v33_v4  ;;  %v120_v14 = vsub.f32 %v25_v2, %v36_v5  ;;  %v127_v15 = vsub.f32 %v26_v3, %v39_v7 }
   0x5   :  { %v134_v16 = vsub.f32 %v27_v6, %v42_v10  ;;  %v101_v17 = vand.u32 4294901760, %v30_v11  ;;  %v660_v18 = vpack.c.bf16 %v42_v10, %v39_v7  ;;  %v529_v43 = vmul.f32 %v558_v42, %v521_v41 }
   0x6   :  { %658 = vmatpush3.bf16.msra.mxu0 %v657_v12  ;;  %v114_v19 = vand.u32 4294901760, %v113_v13  ;;  %v121_v20 = vand.u32 4294901760, %v120_v14  ;;  %v128_v21 = vand.u32 4294901760, %v127_v15  ;;  %v669_v35 = vpack.c.bf16 %v120_v14, %v113_v13 }
   0x7   :  { %659 = vmatprep.subr.bf16.mxu0 %v699_v0  ;;  %v102_v22 = vsub.f32 %v30_v11, %v101_v17  ;;  %v135_v23 = vand.u32 4294901760, %v134_v16  ;;  %v672_v38 = vpack.c.bf16 %v134_v16, %v127_v15  ;;  %v530_v44 = vsel %vm28_vm0, %v529_v43, 0.0 }
   0x8   :  { %v115_v24 = vsub.f32 %v113_v13, %v114_v19  ;;  %v122_v25 = vsub.f32 %v120_v14, %v121_v20  ;;  %v129_v26 = vsub.f32 %v127_v15, %v128_v21  ;;  %v681_v39 = vpack.c.bf16 %v121_v20, %v114_v19  ;;  %531 = vadd.xlane.f32.xlu0 %v530_v44 }
   0x9   :  { %v103_v27 = vand.u32 4294901760, %v102_v22  ;;  %v136_v28 = vsub.f32 %v134_v16, %v135_v23  ;;  %v684_v40 = vpack.c.bf16 %v135_v23, %v128_v21  ;;  %v23_v59 = vld [vmem:[#allocation2] sm:$0xff] }
   0xa   :  { %661 = vmatpush3.bf16.msra.mxu0 %v660_v18  ;;  %v116_v29 = vand.u32 4294901760, %v115_v24  ;;  %v123_v30 = vand.u32 4294901760, %v122_v25  ;;  %v130_v31 = vand.u32 4294901760, %v129_v26  ;;  %v520_v3 = vld [vmem:[#allocation3] sm:$0xff] }
   0xb   :  { %668 = vmatprep.subr.bf16.mxu0 %v699_v0  ;;  %v104_v32 = vsub.f32 %v102_v22, %v103_v27  ;;  %v137_v33 = vand.u32 4294901760, %v136_v28 }
   0xc   :  { %v663_v34 = vpack.c.bf16 %v123_v30, %v116_v29 }
   0xd   :  { %v105_v36 = vand.u32 4294901760, %v104_v32  ;;  %v666_v37 = vpack.c.bf16 %v137_v33, %v130_v31 }
   0xe   :  { %664 = vmatpush3.bf16.msra.mxu1 %v663_v34 }
   0xf   :  { %599 = vmatmul.mubr.f32.vlgmr.msra.gmra.mrb[0].mxu0 %v105_v36  ;;  %665 = vmatprep.subr.bf16.mxu1 %v699_v0 }
  0x10   :  { %670 = vmatpush3.bf16.msra.mxu0 %v669_v35  ;;  %620 = vmatprep.mubr.msk.f32.mxu0 %vm700_vm1, %v701_v8 }
  0x11   :  { %671 = vmatprep.subr.bf16.mxu0 %v699_v0 }
  0x12   :  { %667 = vmatpush3.bf16.msra.mxu1 %v666_v37 }
  0x13   :  { %674 = vmatprep.subr.bf16.mxu1 %v699_v0 }
  0x14   :  { %673 = vmatpush3.bf16.msra.mxu0 %v672_v38 }
  0x15   :  { %610 = vmatmul.mubr.f32.vlgmr.msra.gmra.mrb[0].mxu1 %v101_v17  ;;  %680 = vmatprep.subr.bf16.mxu0 %v699_v0 }
  0x16   :  { %676 = vmatpush3.bf16.msra.mxu1 %v657_v12  ;;  %631 = vmatprep.mubr.msk.f32.mxu1 %vm700_vm1, %v701_v8 }
  0x17   :  { %621 = vmatmul.mubr.f32.vlgmr.msra.gmra.mrb[2].mxu0 %v102_v22  ;;  %677 = vmatprep.subr.bf16.mxu1 %v699_v0 }
  0x18   :  { %682 = vmatpush3.bf16.msra.mxu0 %v681_v39  ;;  %642 = vmatprep.mubr.msk.f32.mxu0 %vm700_vm1, %v701_v8 }
  0x19   :  { %683 = vmatprep.subr.bf16.mxu0 %v699_v0 }
  0x1a   :  { %679 = vmatpush3.bf16.msra.mxu1 %v660_v18 }
  0x1b   :  { %686 = vmatprep.subr.bf16.mxu1 %v699_v0 }
  0x1c   :  { %685 = vmatpush3.bf16.msra.mxu0 %v684_v40 }
  0x1d   :  { %632 = vmatmul.mubr.f32.vlgmr.msra.gmra.mrb[2].mxu1 %v103_v27 }
  0x1e   :  { %688 = vmatpush3.bf16.msra.mxu1 %v657_v12  ;;  %653 = vmatprep.mubr.msk.f32.mxu1 %vm700_vm1, %v701_v8 }
  0x1f   :  { %643 = vmatmul.mubr.f32.vlgmr.msra.gmra.mrb[4].mxu0 %v101_v17  ;;  %689 = vmatprep.subr.bf16.mxu1 %v699_v0 }
  0x22   :  { %691 = vmatpush3.bf16.msra.mxu1 %v660_v18 }
  0x25   :  { %654 = vmatmul.mubr.f32.vlgmr.msra.gmra.mrb[4].mxu1 %v101_v17 }
  0x95   :  { %v532_v4 = vpop.xlane.xlu0 %531 }
  0x96   :  { %v533_v5 = vadd.f32 %v532_v4, %v520_v3 }
  0x98   :  { %535 = vst.msk [vmem:[#allocation3] sm:$0xff] %vm20_vm3, %v533_v5 }
  0x9f   :  { %v544_v6 = vld [vmem:[#allocation3] sm:$0xff] }
  0xe2   :  { %v107_v45 = vpop.f32.mrb[0].mxu0 }
  0xe3   :  { %v600_v46 = vpop.f32.mrb[1].mxu0 }
  0xe8   :  { %v198_v47 = vpop.f32.mrb[0].mxu1 }
  0xe9   :  { %v199_v48 = vadd.f32 %v198_v47, %v107_v45  ;;  %v611_v49 = vpop.f32.mrb[1].mxu1 }
  0xea   :  { %v278_v50 = vpop.f32.mrb[2].mxu0 }
  0xeb   :  { %v279_v51 = vadd.f32 %v278_v50, %v199_v48  ;;  %v622_v52 = vpop.f32.mrb[3].mxu0 }
  0xf0   :  { %v355_v53 = vpop.f32.mrb[2].mxu1 }
  0xf1   :  { %v356_v54 = vadd.f32 %v355_v53, %v279_v51  ;;  %v633_v55 = vpop.f32.mrb[3].mxu1 }
  0xf2   :  { %v438_v56 = vpop.f32.mrb[4].mxu0 }
  0xf3   :  { %v439_v57 = vadd.f32 %v438_v56, %v356_v54  ;;  %v644_v58 = vpop.f32.mrb[5].mxu0 }
  0xf8   :  { %v513_v60 = vpop.f32.mrb[4].mxu1 }
  0xf9   :  { %v514_v61 = vadd.f32 %v513_v60, %v439_v57  ;;  %v655_v62 = vpop.f32.mrb[5].mxu1 }
  0xfb   :  { %v517_v63 = vadd.f32 %v514_v61, %v23_v59 }
  0xfd   :  { %519 = vst.msk [vmem:[#allocation2] sm:$0xff] %vm18_vm2, %v517_v63 }
 0x104   :  { %v539_v0 = vld [vmem:[#allocation2] sm:$0xff] }
 0x105   :  { %v540_v1 = vmul.f32 %v539_v0, %v539_v0 }
 0x107   :  { %v541_v2 = vsel %vm18_vm2, %v540_v1, 0.0 }
 0x108   :  { %542 = vadd.xlane.f32.xlu0 %v541_v2 }
 0x195   :  { %v543_v7 = vpop.xlane.xlu0 %542 }
 0x196   :  { %v545_v8 = vsub.f32 %v543_v7, %v544_v6 }
 0x198   :  { %v559_v9 = vmul.f32 -0.125, %v545_v8 }
 0x19a   :  { %v548_v10 = vmul.f32 1.442695, %v559_v9 }
 0x19c   :  { %695 = vpow2.f32 %v548_v10 }
 0x1a6   :  { %v696_v11 = vpop.eup %695 }
 0x1a7   :  { %v550_v12 = vadd.f32 1.0, %v696_v11 }
 0x1a9   :  { %697 = vrcp.f32 %v550_v12 }
 0x1b3   :  { %v698_v13 = vpop.eup %697 }
 0x1b4   :  { %553 = vst.msk [vmem:[%s785_s3] sm:$0xff] %vm20_vm3, %v698_v13 }

</bundles_post_ra>
